<compile_context>
chip_gen: v5e
topology: v5e:2x2
jax: 0.10.0
libtpu: 0.0.40
codegen_flags: <defaults>
</compile_context>

<pallas_src>
import jax
import jax.numpy as jnp
from jax.experimental import pallas as pl
from jax.experimental.pallas import tpu as pltpu


def _round_up(x, m):
    return ((x + m - 1) // m) * m


def _combined_fc_kernel(x_ref, weff_ref, beff_ref, w2t_ref, b2_ref, out_ref):
    # x: (TB, D), weff: (D, 3), beff: (1, 3), w2t: (1, 3), b2: (1, 1)
    # Fused ensemble + fc[0]:   h = relu(x @ Weff + beff)        (MXU)
    h = jnp.dot(x_ref[...], weff_ref[...],
                preferred_element_type=jnp.float32) + beff_ref[...]       # (TB, 3)
    h = jnp.maximum(h, 0.0)

    # fc[2]: Linear(3, 1) -> ReLU, done on VPU + XLU (K=3 is pure MXU padding)
    y = jnp.sum(h * w2t_ref[...], axis=1, keepdims=True) + b2_ref[...]    # (TB, 1)
    y = jnp.maximum(y, 0.0)

    out_ref[...] = y.astype(out_ref.dtype)


def combined_fc(x_nchw, wens, bens, w1, b1, w2, b2):
    """Fused CombinedFC forward.

    x_nchw: (B, C, H, W) float32
    wens:   (D, N)  ensemble of N Linear(D,1) sub-models (pre-transposed)
    bens:   (1, N)
    w1:     (N, 3)  fc[0].weight.T   (non-negative, as in the module __init__)
    b1:     (1, 3)
    w2:     (3, 1)  fc[2].weight.T   (non-negative)
    b2:     (1, 1)
    returns (B,) float32, matching outputs.flatten()
    """
    B = x_nchw.shape[0]
    D = int(x_nchw.shape[1] * x_nchw.shape[2] * x_nchw.shape[3])
    x = x_nchw.reshape(B, D).astype(jnp.float32)

    # ---- fold fc[0] into the ensemble weights (linear composition, exact) ---
    w1f = w1.astype(jnp.float32)
    weff = wens.astype(jnp.float32) @ w1f                                  # (D, H)
    beff = bens.astype(jnp.float32) @ w1f + b1.astype(jnp.float32)         # (1, H)
    w2t = w2.astype(jnp.float32).reshape(1, -1)                            # (1, H)
    b2r = b2.astype(jnp.float32).reshape(1, 1)                             # (1, 1)
    H = weff.shape[1]

    # ---- batch tiling: ~4 MiB per (TB, D) f32 buffer, multiple of 8 rows ----
    target_bytes = 4 * 1024 * 1024
    tb = max(8, (target_bytes // (D * 4)) // 8 * 8)
    tb = min(tb, 2048)
    tb = min(tb, _round_up(B, 8))          # don't over-tile tiny batches
    b_pad = _round_up(B, tb)
    if b_pad != B:
        x = jnp.pad(x, ((0, b_pad - B), (0, 0)))
    num_tiles = b_pad // tb

    out = pl.pallas_call(
        _combined_fc_kernel,
        out_shape=jax.ShapeDtypeStruct((b_pad, 1), jnp.float32),
        grid=(num_tiles,),
        in_specs=[
            pl.BlockSpec((tb, D), lambda i: (i, 0)),   # streamed batch tiles
            pl.BlockSpec((D, H), lambda i: (0, 0)),    # VMEM-resident weights
            pl.BlockSpec((1, H), lambda i: (0, 0)),
            pl.BlockSpec((1, H), lambda i: (0, 0)),
            pl.BlockSpec((1, 1), lambda i: (0, 0)),
        ],
        out_specs=pl.BlockSpec((tb, 1), lambda i: (i, 0)),
        compiler_params=pltpu.CompilerParams(
            dimension_semantics=("parallel",),         # megacore-shard batch axis
            vmem_limit_bytes=32 * 1024 * 1024,
        ),
    )(x, weff, beff, w2t, b2r)

    return out.reshape(b_pad)[:B]


def reference(x_nchw, wens, bens, w1, b1, w2, b2):
    """Unfolded reference matching the PyTorch module's forward."""
    B = x_nchw.shape[0]
    x = x_nchw.reshape(B, -1).astype(jnp.float32)
    scores = x @ wens + bens                      # stack + transpose -> (B, N)
    h = jnp.maximum(scores @ w1 + b1, 0.0)        # Linear(N,3) -> ReLU
    y = jnp.maximum(h @ w2 + b2, 0.0)             # Linear(3,1) -> ReLU
    return y.reshape(B)                           # flatten


if __name__ == "__main__":
    key = jax.random.PRNGKey(0)
    B, C, H, W = 2, 4, 16, 16
    D = C * H * W
    N_MODELS = 4          # number of sub-models in the ensemble
    HIDDEN = 3            # Linear(num_models, 3)

    ks = jax.random.split(key, 8)

    x = jax.random.normal(ks[0], (B, C, H, W), dtype=jnp.float32)

    # Synthetic sub-models: N linear scorers Linear(D, 1), packed as (D, N).
    wens = jax.random.normal(ks[1], (D, N_MODELS), dtype=jnp.float32) * (1.0 / jnp.sqrt(D))
    bens = jax.random.normal(ks[2], (1, N_MODELS), dtype=jnp.float32) * 0.1

    # fc[0]: Linear(N_MODELS, 3) with abs() applied to the weight (per __init__).
    w1 = jnp.abs(jax.random.normal(ks[3], (N_MODELS, HIDDEN), dtype=jnp.float32)
                 * (1.0 / jnp.sqrt(N_MODELS)))
    b1 = jax.random.normal(ks[4], (1, HIDDEN), dtype=jnp.float32) * 0.1

    # fc[2]: Linear(3, 1) with abs() applied to the weight.
    w2 = jnp.abs(jax.random.normal(ks[5], (HIDDEN, 1), dtype=jnp.float32)
                 * (1.0 / jnp.sqrt(HIDDEN)))
    b2 = jax.random.normal(ks[6], (1, 1), dtype=jnp.float32) * 0.1

    out = combined_fc(x, wens, bens, w1, b1, w2, b2)
    out = jax.block_until_ready(out)

    ref = reference(x, wens, bens, w1, b1, w2, b2)
    assert out.shape == (B,)
    assert jnp.allclose(out, ref, atol=1e-4, rtol=1e-4), (out, ref)

    print("KERNEL_OK")
</pallas_src>

<mosaic_0001>
module attributes {stable_mosaic.version = 11 : i64} {
  func.func @_combined_fc_kernel(%arg0: i32, %arg1: memref<8x1024xf32, #tpu.memory_space<vmem>>, %arg2: memref<1024x3xf32, #tpu.memory_space<vmem>>, %arg3: memref<1x3xf32, #tpu.memory_space<vmem>>, %arg4: memref<1x3xf32, #tpu.memory_space<vmem>>, %arg5: memref<1x1xf32, #tpu.memory_space<vmem>>, %arg6: memref<8x1xf32, #tpu.memory_space<vmem>>) attributes {dimension_semantics = [#tpu.dimension_semantics<parallel>], iteration_bounds = array<i64: 1>, scalar_prefetch = 0 : i64, scratch_operands = 0 : i64, tpu.core_type = #tpu.core_type<tc>, window_params = [{transform_indices = @transform_0, window_bounds = array<i64: 8, 1024>}, {pipeline_mode = #tpu.pipeline_mode<synchronous>, transform_indices = @transform_1, window_bounds = array<i64: 1024, 3>}, {pipeline_mode = #tpu.pipeline_mode<synchronous>, transform_indices = @transform_2, window_bounds = array<i64: 1, 3>}, {pipeline_mode = #tpu.pipeline_mode<synchronous>, transform_indices = @transform_3, window_bounds = array<i64: 1, 3>}, {pipeline_mode = #tpu.pipeline_mode<synchronous>, transform_indices = @transform_4, window_bounds = array<i64: 1, 1>}, {transform_indices = @transform_5, window_bounds = array<i64: 8, 1>}]} {
    %c0 = arith.constant 0 : index
    %c0_0 = arith.constant 0 : index
    %0 = vector.load %arg1[%c0, %c0_0] : memref<8x1024xf32, #tpu.memory_space<vmem>>, vector<8x1024xf32>
    %c0_1 = arith.constant 0 : index
    %c0_2 = arith.constant 0 : index
    %1 = vector.load %arg2[%c0_1, %c0_2] : memref<1024x3xf32, #tpu.memory_space<vmem>>, vector<1024x3xf32>
    %cst = arith.constant dense<0.000000e+00> : vector<8x3xf32>
    %2 = tpu.matmul %0, %1, %cst {dimension_numbers = #tpu.dot_dimension_numbers<[1], [0], [0], [1], [0, 0, 1, 1], [], []>} : vector<8x1024xf32>, vector<1024x3xf32>, vector<8x3xf32> -> vector<8x3xf32>
    %c0_3 = arith.constant 0 : index
    %c0_4 = arith.constant 0 : index
    %3 = vector.load %arg3[%c0_3, %c0_4] : memref<1x3xf32, #tpu.memory_space<vmem>>, vector<1x3xf32>
    %4 = vector.broadcast %3 : vector<1x3xf32> to vector<8x3xf32>
    %5 = arith.addf %2, %4 : vector<8x3xf32>
    %cst_5 = arith.constant 0.000000e+00 : f32
    %6 = vector.broadcast %cst_5 : f32 to vector<8x3xf32>
    %7 = arith.maximumf %5, %6 : vector<8x3xf32>
    %c0_6 = arith.constant 0 : index
    %c0_7 = arith.constant 0 : index
    %8 = vector.load %arg4[%c0_6, %c0_7] : memref<1x3xf32, #tpu.memory_space<vmem>>, vector<1x3xf32>
    %9 = vector.broadcast %8 : vector<1x3xf32> to vector<8x3xf32>
    %10 = arith.mulf %7, %9 : vector<8x3xf32>
    %cst_8 = arith.constant dense<0.000000e+00> : vector<8xf32>
    %11 = vector.multi_reduction <add>, %10, %cst_8 [1] : vector<8x3xf32> to vector<8xf32>
    %12 = vector.shape_cast %11 : vector<8xf32> to vector<8x1xf32>
    %c0_9 = arith.constant 0 : index
    %c0_10 = arith.constant 0 : index
    %13 = vector.load %arg5[%c0_9, %c0_10] : memref<1x1xf32, #tpu.memory_space<vmem>>, vector<1x1xf32>
    %14 = vector.broadcast %13 : vector<1x1xf32> to vector<8x1xf32>
    %15 = arith.addf %12, %14 : vector<8x1xf32>
    %cst_11 = arith.constant 0.000000e+00 : f32
    %16 = vector.broadcast %cst_11 : f32 to vector<8x1xf32>
    %17 = arith.maximumf %15, %16 : vector<8x1xf32>
    %c0_12 = arith.constant 0 : index
    %c0_13 = arith.constant 0 : index
    %18 = vector.load %arg6[%c0_12, %c0_13] : memref<8x1xf32, #tpu.memory_space<vmem>>, vector<8x1xf32>
    tpu.vector_store %arg6[%c0_12, %c0_13], %17 {strides = array<i32>} : memref<8x1xf32, #tpu.memory_space<vmem>>, vector<8x1xf32>,
    return
  }
  func.func @transform_0(%arg0: i32) -> (i32, i32) {
    %c0_i32 = arith.constant 0 : i32
    %c0_i32_0 = arith.constant 0 : i32
    return %arg0, %c0_i32 : i32, i32
  }
  func.func @transform_1(%arg0: i32) -> (i32, i32) {
    %c0_i32 = arith.constant 0 : i32
    %c0_i32_0 = arith.constant 0 : i32
    %c0_i32_1 = arith.constant 0 : i32
    return %c0_i32, %c0_i32_0 : i32, i32
  }
  func.func @transform_2(%arg0: i32) -> (i32, i32) {
    %c0_i32 = arith.constant 0 : i32
    %c0_i32_0 = arith.constant 0 : i32
    %c0_i32_1 = arith.constant 0 : i32
    return %c0_i32, %c0_i32_0 : i32, i32
  }
  func.func @transform_3(%arg0: i32) -> (i32, i32) {
    %c0_i32 = arith.constant 0 : i32
    %c0_i32_0 = arith.constant 0 : i32
    %c0_i32_1 = arith.constant 0 : i32
    return %c0_i32, %c0_i32_0 : i32, i32
  }
  func.func @transform_4(%arg0: i32) -> (i32, i32) {
    %c0_i32 = arith.constant 0 : i32
    %c0_i32_0 = arith.constant 0 : i32
    %c0_i32_1 = arith.constant 0 : i32
    return %c0_i32, %c0_i32_0 : i32, i32
  }
  func.func @transform_5(%arg0: i32) -> (i32, i32) {
    %c0_i32 = arith.constant 0 : i32
    %c0_i32_0 = arith.constant 0 : i32
    return %arg0, %c0_i32 : i32, i32
  }
}

</mosaic_0001>

<bundles_post_ra>
// kernel: tpu_custom_call.1
= control target key start
LH: loop header
LB: loop body
LE: loop exit
PB: predicated region body
PF: predicated region fallthrough
CT: control target
= control target key end

     0   :  { %vm328_vm0 = vcmask 23552   ;;  %vm338_vm1 = vcmask 7168   ;;  %s797_s1 = inlined_call_operand.vmem [shape: f32[1024,3], index: 1, kind: input, shape index: {}]   ;;  %s798_s2 = inlined_call_operand.vmem [shape: f32[1,3], index: 2, kind: input, shape index: {}]   ;;  %s799_s0 = inlined_call_operand.vmem [shape: f32[8,1024], index: 0, kind: input, shape index: {}]   ;;  %s800_s3 = inlined_call_operand.vmem [shape: f32[1,3], index: 3, kind: input, shape index: {}]   ;;  %s801_s4 = inlined_call_operand.<no memory space> [shape: f32[1,1], index: 4, kind: input, shape index: {}]   ;;  %s802_s5 = inlined_call_operand.vmem [shape: f32[8,1], index: 5, kind: output, shape index: {}]  }
   0x1   :  { %v77_v0 = vld [vmem:[%s797_s1 + $0x178] sm:$0xff]  ;;  %v76_v2 = vld [vmem:[%s797_s1 + $0x170] sm:$0xff]  ;;  %v75_v6 = vld [vmem:[%s797_s1 + $0x168] sm:$0xff] }
   0x2   :  { %v45_v1 = vld [vmem:[%s797_s1 + $0x78] sm:$0xff]  ;;  %202 = vmatpush.msra.mxu2 %v77_v0  ;;  %v44_v4 = vld [vmem:[%s797_s1 + $0x70] sm:$0xff]  ;;  %v43_v8 = vld [vmem:[%s797_s1 + $0x68] sm:$0xff] }
   0x3   :  { %162 = vmatpush.msra.mxu0 %v45_v1  ;;  %v93_v3 = vld [vmem:[%s797_s1 + $0x1f8] sm:$0xff]  ;;  %v92_v7 = vld [vmem:[%s797_s1 + $0x1f0] sm:$0xff]  ;;  %v91_v10 = vld [vmem:[%s797_s1 + $0x1e8] sm:$0xff] }
   0x4   :  { %v61_v5 = vld [vmem:[%s797_s1 + $0xf8] sm:$0xff]  ;;  %222 = vmatpush.msra.mxu3 %v93_v3  ;;  %203 = vmatpush.msra.mxu2 %v76_v2  ;;  %v60_v9 = vld [vmem:[%s797_s1 + $0xf0] sm:$0xff]  ;;  %v74_v11 = vld [vmem:[%s797_s1 + $0x160] sm:$0xff] }
   0x5   :  { %182 = vmatpush.msra.mxu1 %v61_v5  ;;  %163 = vmatpush.msra.mxu0 %v44_v4  ;;  %v42_v12 = vld [vmem:[%s797_s1 + $0x60] sm:$0xff]  ;;  %v59_v13 = vld [vmem:[%s797_s1 + $0xe8] sm:$0xff]  ;;  %v73_v16 = vld [vmem:[%s797_s1 + $0x158] sm:$0xff] }
   0x6   :  { %223 = vmatpush.msra.mxu3 %v92_v7  ;;  %204 = vmatpush.msra.mxu2 %v75_v6  ;;  %v90_v14 = vld [vmem:[%s797_s1 + $0x1e0] sm:$0xff]  ;;  %v41_v17 = vld [vmem:[%s797_s1 + $0x58] sm:$0xff]  ;;  %v72_v20 = vld [vmem:[%s797_s1 + $0x150] sm:$0xff] }
   0x7   :  { %183 = vmatpush.msra.mxu1 %v60_v9  ;;  %164 = vmatpush.msra.mxu0 %v43_v8  ;;  %v58_v15 = vld [vmem:[%s797_s1 + $0xe0] sm:$0xff]  ;;  %v89_v18 = vld [vmem:[%s797_s1 + $0x1d8] sm:$0xff]  ;;  %v40_v21 = vld [vmem:[%s797_s1 + $0x50] sm:$0xff] }
   0x8   :  { %224 = vmatpush.msra.mxu3 %v91_v10  ;;  %205 = vmatpush.msra.mxu2 %v74_v11  ;;  %v57_v19 = vld [vmem:[%s797_s1 + $0xd8] sm:$0xff]  ;;  %v88_v22 = vld [vmem:[%s797_s1 + $0x1d0] sm:$0xff]  ;;  %v71_v24 = vld [vmem:[%s797_s1 + $0x148] sm:$0xff] }
   0x9   :  { %184 = vmatpush.msra.mxu1 %v59_v13  ;;  %165 = vmatpush.msra.mxu0 %v42_v12  ;;  %v56_v23 = vld [vmem:[%s797_s1 + $0xd0] sm:$0xff]  ;;  %v39_v25 = vld [vmem:[%s797_s1 + $0x48] sm:$0xff]  ;;  %v70_v28 = vld [vmem:[%s797_s1 + $0x140] sm:$0xff] }
   0xa   :  { %225 = vmatpush.msra.mxu3 %v90_v14  ;;  %206 = vmatpush.msra.mxu2 %v73_v16  ;;  %v87_v26 = vld [vmem:[%s797_s1 + $0x1c8] sm:$0xff]  ;;  %v38_v29 = vld [vmem:[%s797_s1 + $0x40] sm:$0xff]  ;;  %v69_v32 = vld [vmem:[%s797_s1 + $0x138] sm:$0xff] }
   0xb   :  { %185 = vmatpush.msra.mxu1 %v58_v15  ;;  %166 = vmatpush.msra.mxu0 %v41_v17  ;;  %v55_v27 = vld [vmem:[%s797_s1 + $0xc8] sm:$0xff]  ;;  %v86_v30 = vld [vmem:[%s797_s1 + $0x1c0] sm:$0xff]  ;;  %v37_v33 = vld [vmem:[%s797_s1 + $0x38] sm:$0xff] }
   0xc   :  { %226 = vmatpush.msra.mxu3 %v89_v18  ;;  %207 = vmatpush.msra.mxu2 %v72_v20  ;;  %v54_v31 = vld [vmem:[%s797_s1 + $0xc0] sm:$0xff]  ;;  %v85_v34 = vld [vmem:[%s797_s1 + $0x1b8] sm:$0xff]  ;;  %v68_v36 = vld [vmem:[%s797_s1 + $0x130] sm:$0xff] }
   0xd   :  { %186 = vmatpush.msra.mxu1 %v57_v19  ;;  %167 = vmatpush.msra.mxu0 %v40_v21  ;;  %v53_v35 = vld [vmem:[%s797_s1 + $0xb8] sm:$0xff]  ;;  %v36_v37 = vld [vmem:[%s797_s1 + $0x30] sm:$0xff]  ;;  %v67_v40 = vld [vmem:[%s797_s1 + $0x128] sm:$0xff] }
   0xe   :  { %227 = vmatpush.msra.mxu3 %v88_v22  ;;  %208 = vmatpush.msra.mxu2 %v71_v24  ;;  %v84_v38 = vld [vmem:[%s797_s1 + $0x1b0] sm:$0xff]  ;;  %v35_v41 = vld [vmem:[%s797_s1 + $0x28] sm:$0xff]  ;;  %v66_v44 = vld [vmem:[%s797_s1 + $0x120] sm:$0xff] }
   0xf   :  { %187 = vmatpush.msra.mxu1 %v56_v23  ;;  %168 = vmatpush.msra.mxu0 %v39_v25  ;;  %v52_v39 = vld [vmem:[%s797_s1 + $0xb0] sm:$0xff]  ;;  %v83_v42 = vld [vmem:[%s797_s1 + $0x1a8] sm:$0xff]  ;;  %v34_v45 = vld [vmem:[%s797_s1 + $0x20] sm:$0xff] }
  0x10   :  { %228 = vmatpush.msra.mxu3 %v87_v26  ;;  %209 = vmatpush.msra.mxu2 %v70_v28  ;;  %v51_v43 = vld [vmem:[%s797_s1 + $0xa8] sm:$0xff]  ;;  %v82_v46 = vld [vmem:[%s797_s1 + $0x1a0] sm:$0xff]  ;;  %v65_v48 = vld [vmem:[%s797_s1 + $0x118] sm:$0xff] }
  0x11   :  { %188 = vmatpush.msra.mxu1 %v55_v27  ;;  %169 = vmatpush.msra.mxu0 %v38_v29  ;;  %v50_v47 = vld [vmem:[%s797_s1 + $0xa0] sm:$0xff]  ;;  %v33_v49 = vld [vmem:[%s797_s1 + $0x18] sm:$0xff]  ;;  %v64_v52 = vld [vmem:[%s797_s1 + $0x110] sm:$0xff] }
  0x12   :  { %229 = vmatpush.msra.mxu3 %v86_v30  ;;  %210 = vmatpush.msra.mxu2 %v69_v32  ;;  %v81_v50 = vld [vmem:[%s797_s1 + $0x198] sm:$0xff]  ;;  %v32_v53 = vld [vmem:[%s797_s1 + $0x10] sm:$0xff]  ;;  %v63_v56 = vld [vmem:[%s797_s1 + $0x108] sm:$0xff] }
  0x13   :  { %189 = vmatpush.msra.mxu1 %v54_v31  ;;  %170 = vmatpush.msra.mxu0 %v37_v33  ;;  %v49_v51 = vld [vmem:[%s797_s1 + $0x98] sm:$0xff]  ;;  %v80_v54 = vld [vmem:[%s797_s1 + $0x190] sm:$0xff]  ;;  %v31_v57 = vld [vmem:[%s797_s1 + $0x8] sm:$0xff] }
  0x14   :  { %230 = vmatpush.msra.mxu3 %v85_v34  ;;  %211 = vmatpush.msra.mxu2 %v68_v36  ;;  %v48_v55 = vld [vmem:[%s797_s1 + $0x90] sm:$0xff]  ;;  %v79_v58 = vld [vmem:[%s797_s1 + $0x188] sm:$0xff]  ;;  %v62_v60 = vld [vmem:[%s797_s1 + $0x100] sm:$0xff] }
  0x15   :  { %190 = vmatpush.msra.mxu1 %v53_v35  ;;  %171 = vmatpush.msra.mxu0 %v36_v37  ;;  %v47_v59 = vld [vmem:[%s797_s1 + $0x88] sm:$0xff]  ;;  %v30_v61 = vld [vmem:[%s797_s1] sm:$0xff]  ;;  %v141_v62 = vld [vmem:[%s797_s1 + $0x378] sm:$0xff] }
  0x16   :  { %231 = vmatpush.msra.mxu3 %v84_v38  ;;  %212 = vmatpush.msra.mxu2 %v67_v40  ;;  %v78_v63 = vld [vmem:[%s797_s1 + $0x180] sm:$0xff]  ;;  %v109_v0 = vld [vmem:[%s797_s1 + $0x278] sm:$0xff]  ;;  %v140_v2 = vld [vmem:[%s797_s1 + $0x370] sm:$0xff] }
  0x17   :  { %191 = vmatpush.msra.mxu1 %v52_v39  ;;  %172 = vmatpush.msra.mxu0 %v35_v41  ;;  %v157_v1 = vld [vmem:[%s797_s1 + $0x3f8] sm:$0xff]  ;;  %v46_v3 = vld [vmem:[%s797_s1 + $0x80] sm:$0xff]  ;;  %v108_v4 = vld [vmem:[%s797_s1 + $0x270] sm:$0xff] }
  0x18   :  { %232 = vmatpush.msra.mxu3 %v83_v42  ;;  %213 = vmatpush.msra.mxu2 %v66_v44  ;;  %v125_v5 = vld [vmem:[%s797_s1 + $0x2f8] sm:$0xff]  ;;  %v139_v6 = vld [vmem:[%s797_s1 + $0x368] sm:$0xff]  ;;  %v156_v7 = vld [vmem:[%s797_s1 + $0x3f0] sm:$0xff] }
  0x19   :  { %192 = vmatpush.msra.mxu1 %v51_v43  ;;  %173 = vmatpush.msra.mxu0 %v34_v45  ;;  %v107_v8 = vld [vmem:[%s797_s1 + $0x268] sm:$0xff]  ;;  %v124_v9 = vld [vmem:[%s797_s1 + $0x2f0] sm:$0xff]  ;;  %v138_v10 = vld [vmem:[%s797_s1 + $0x360] sm:$0xff] }
  0x1a   :  { %233 = vmatpush.msra.mxu3 %v82_v46  ;;  %214 = vmatpush.msra.mxu2 %v65_v48  ;;  %v155_v11 = vld [vmem:[%s797_s1 + $0x3e8] sm:$0xff]  ;;  %v106_v12 = vld [vmem:[%s797_s1 + $0x260] sm:$0xff]  ;;  %v137_v14 = vld [vmem:[%s797_s1 + $0x358] sm:$0xff] }
  0x1b   :  { %193 = vmatpush.msra.mxu1 %v50_v47  ;;  %174 = vmatpush.msra.mxu0 %v33_v49  ;;  %v123_v13 = vld [vmem:[%s797_s1 + $0x2e8] sm:$0xff]  ;;  %v154_v15 = vld [vmem:[%s797_s1 + $0x3e0] sm:$0xff]  ;;  %v105_v16 = vld [vmem:[%s797_s1 + $0x258] sm:$0xff] }
  0x1c   :  { %234 = vmatpush.msra.mxu3 %v81_v50  ;;  %215 = vmatpush.msra.mxu2 %v64_v52  ;;  %v122_v17 = vld [vmem:[%s797_s1 + $0x2e0] sm:$0xff]  ;;  %v136_v18 = vld [vmem:[%s797_s1 + $0x350] sm:$0xff]  ;;  %v153_v19 = vld [vmem:[%s797_s1 + $0x3d8] sm:$0xff] }
  0x1d   :  { %194 = vmatpush.msra.mxu1 %v49_v51  ;;  %175 = vmatpush.msra.mxu0 %v32_v53  ;;  %v104_v20 = vld [vmem:[%s797_s1 + $0x250] sm:$0xff]  ;;  %v121_v21 = vld [vmem:[%s797_s1 + $0x2d8] sm:$0xff]  ;;  %v135_v22 = vld [vmem:[%s797_s1 + $0x348] sm:$0xff] }
  0x1e   :  { %235 = vmatpush.msra.mxu3 %v80_v54  ;;  %216 = vmatpush.msra.mxu2 %v63_v56  ;;  %v152_v23 = vld [vmem:[%s797_s1 + $0x3d0] sm:$0xff]  ;;  %v103_v24 = vld [vmem:[%s797_s1 + $0x248] sm:$0xff]  ;;  %v134_v26 = vld [vmem:[%s797_s1 + $0x340] sm:$0xff] }
  0x1f   :  { %195 = vmatpush.msra.mxu1 %v48_v55  ;;  %176 = vmatpush.msra.mxu0 %v31_v57  ;;  %v120_v25 = vld [vmem:[%s797_s1 + $0x2d0] sm:$0xff]  ;;  %v151_v27 = vld [vmem:[%s797_s1 + $0x3c8] sm:$0xff]  ;;  %v102_v28 = vld [vmem:[%s797_s1 + $0x240] sm:$0xff] }
  0x20   :  { %236 = vmatpush.msra.mxu3 %v79_v58  ;;  %217 = vmatpush.msra.mxu2 %v62_v60  ;;  %v119_v29 = vld [vmem:[%s797_s1 + $0x2c8] sm:$0xff]  ;;  %v133_v30 = vld [vmem:[%s797_s1 + $0x338] sm:$0xff]  ;;  %v150_v31 = vld [vmem:[%s797_s1 + $0x3c0] sm:$0xff] }
  0x21   :  { %196 = vmatpush.msra.mxu1 %v47_v59  ;;  %177 = vmatpush.msra.mxu0 %v30_v61  ;;  %v101_v32 = vld [vmem:[%s797_s1 + $0x238] sm:$0xff]  ;;  %v118_v33 = vld [vmem:[%s797_s1 + $0x2c0] sm:$0xff]  ;;  %v132_v34 = vld [vmem:[%s797_s1 + $0x330] sm:$0xff] }
  0x22   :  { %282 = vmatpush.msrb.mxu2 %v141_v62  ;;  %237 = vmatpush.msra.mxu3 %v78_v63  ;;  %v149_v35 = vld [vmem:[%s797_s1 + $0x3b8] sm:$0xff]  ;;  %v100_v36 = vld [vmem:[%s797_s1 + $0x230] sm:$0xff]  ;;  %v131_v38 = vld [vmem:[%s797_s1 + $0x328] sm:$0xff] }
  0x23   :  { %242 = vmatpush.msrb.mxu0 %v109_v0  ;;  %197 = vmatpush.msra.mxu1 %v46_v3  ;;  %v117_v37 = vld [vmem:[%s797_s1 + $0x2b8] sm:$0xff]  ;;  %v148_v39 = vld [vmem:[%s797_s1 + $0x3b0] sm:$0xff]  ;;  %v99_v40 = vld [vmem:[%s797_s1 + $0x228] sm:$0xff] }
  0x24   :  { %302 = vmatpush.msrb.mxu3 %v157_v1  ;;  %283 = vmatpush.msrb.mxu2 %v140_v2  ;;  %v116_v41 = vld [vmem:[%s797_s1 + $0x2b0] sm:$0xff]  ;;  %v130_v42 = vld [vmem:[%s797_s1 + $0x320] sm:$0xff]  ;;  %v147_v43 = vld [vmem:[%s797_s1 + $0x3a8] sm:$0xff] }
  0x25   :  { %243 = vmatpush.msrb.mxu0 %v108_v4  ;;  %262 = vmatpush.msrb.mxu1 %v125_v5  ;;  %v24_v44 = vld [vmem:[%s799_s0 + $0x10] sm:$0xff]  ;;  %v98_v45 = vld [vmem:[%s797_s1 + $0x220] sm:$0xff]  ;;  %v115_v46 = vld [vmem:[%s797_s1 + $0x2a8] sm:$0xff] }
  0x26   :  { %284 = vmatpush.msrb.mxu2 %v139_v6  ;;  %303 = vmatpush.msrb.mxu3 %v156_v7  ;;  %v129_v47 = vld [vmem:[%s797_s1 + $0x318] sm:$0xff]  ;;  %v146_v48 = vld [vmem:[%s797_s1 + $0x3a0] sm:$0xff]  ;;  %v128_v53 = vld [vmem:[%s797_s1 + $0x310] sm:$0xff] }
  0x27   :  { %244 = vmatpush.msrb.mxu0 %v107_v8  ;;  %263 = vmatpush.msrb.mxu1 %v124_v9  ;;  %v22_v49 = vld [vmem:[%s799_s0] sm:$0xff]  ;;  %v25_v50 = vld [vmem:[%s799_s0 + $0x18] sm:$0xff]  ;;  %v23_v55 = vld [vmem:[%s799_s0 + $0x8] sm:$0xff]  ;;  %v10_v8 = vstv %s801_s4 }
  0x28   :  { %285 = vmatpush.msrb.mxu2 %v138_v10  ;;  %304 = vmatpush.msrb.mxu3 %v155_v11  ;;  %v97_v51 = vld [vmem:[%s797_s1 + $0x218] sm:$0xff]  ;;  %v114_v52 = vld [vmem:[%s797_s1 + $0x2a0] sm:$0xff]  ;;  %v96_v56 = vld [vmem:[%s797_s1 + $0x210] sm:$0xff]  ;;  %11 = vst [vmem:[#allocation2] sm:$0x1] %v10_v8 }
  0x29   :  { %245 = vmatpush.msrb.mxu0 %v106_v12  ;;  %264 = vmatpush.msrb.mxu1 %v123_v13  ;;  %v145_v54 = vld [vmem:[%s797_s1 + $0x398] sm:$0xff]  ;;  %v127_v58 = vld [vmem:[%s797_s1 + $0x308] sm:$0xff]  ;;  %v144_v59 = vld [vmem:[%s797_s1 + $0x390] sm:$0xff] }
  0x2a   :  { %286 = vmatpush.msrb.mxu2 %v137_v14  ;;  %305 = vmatpush.msrb.mxu3 %v154_v15  ;;  %v113_v57 = vld [vmem:[%s797_s1 + $0x298] sm:$0xff]  ;;  %v95_v60 = vld [vmem:[%s797_s1 + $0x208] sm:$0xff]  ;;  %v112_v61 = vld [vmem:[%s797_s1 + $0x290] sm:$0xff] }
  0x2b   :  { %246 = vmatpush.msrb.mxu0 %v105_v16  ;;  %265 = vmatpush.msrb.mxu1 %v122_v17  ;;  %v126_v62 = vld [vmem:[%s797_s1 + $0x300] sm:$0xff]  ;;  %v143_v63 = vld [vmem:[%s797_s1 + $0x388] sm:$0xff]  ;;  %v28_v0 = vld [vmem:[%s799_s0 + $0x30] sm:$0xff] }
  0x2c   :  { %287 = vmatpush.msrb.mxu2 %v136_v18  ;;  %306 = vmatpush.msrb.mxu3 %v153_v19  ;;  %v94_v1 = vld [vmem:[%s797_s1 + $0x200] sm:$0xff]  ;;  %v111_v2 = vld [vmem:[%s797_s1 + $0x288] sm:$0xff]  ;;  %v29_v5 = vld [vmem:[%s799_s0 + $0x38] sm:$0xff] }
  0x2d   :  { %247 = vmatpush.msrb.mxu0 %v104_v20  ;;  %266 = vmatpush.msrb.mxu1 %v121_v21  ;;  %v142_v3 = vld [vmem:[%s797_s1 + $0x380] sm:$0xff]  ;;  %v27_v7 = vld [vmem:[%s799_s0 + $0x28] sm:$0xff] }
  0x2e   :  { %288 = vmatpush.msrb.mxu2 %v135_v22  ;;  %307 = vmatpush.msrb.mxu3 %v152_v23  ;;  %v26_v4 = vld [vmem:[%s799_s0 + $0x20] sm:$0xff] }
  0x2f   :  { %248 = vmatpush.msrb.mxu0 %v103_v24  ;;  %267 = vmatpush.msrb.mxu1 %v120_v25  ;;  %v110_v6 = vld [vmem:[%s797_s1 + $0x280] sm:$0xff] }
  0x30   :  { %289 = vmatpush.msrb.mxu2 %v134_v26  ;;  %308 = vmatpush.msrb.mxu3 %v151_v27  ;;  %v344_v9 = vld [vmem:[%s798_s2] ss:$0 sm:$0xff] }
  0x31   :  { %249 = vmatpush.msrb.mxu0 %v102_v28  ;;  %268 = vmatpush.msrb.mxu1 %v119_v29  ;;  %v345_v26 = vld [vmem:[%s800_s3] ss:$0 sm:$0xff] }
  0x32   :  { %290 = vmatpush.msrb.mxu2 %v133_v30  ;;  %309 = vmatpush.msrb.mxu3 %v150_v31  ;;  %v346_v30 = vld [vmem:[#allocation2] ss:$0 sm:$0xff] }
  0x33   :  { %250 = vmatpush.msrb.mxu0 %v101_v32  ;;  %269 = vmatpush.msrb.mxu1 %v118_v33 }
  0x34   :  { %291 = vmatpush.msrb.mxu2 %v132_v34  ;;  %310 = vmatpush.msrb.mxu3 %v149_v35 }
  0x35   :  { %251 = vmatpush.msrb.mxu0 %v100_v36  ;;  %270 = vmatpush.msrb.mxu1 %v117_v37 }
  0x36   :  { %292 = vmatpush.msrb.mxu2 %v131_v38  ;;  %311 = vmatpush.msrb.mxu3 %v148_v39 }
  0x37   :  { %252 = vmatpush.msrb.mxu0 %v99_v40  ;;  %271 = vmatpush.msrb.mxu1 %v116_v41 }
  0x38   :  { %293 = vmatpush.msrb.mxu2 %v130_v42  ;;  %312 = vmatpush.msrb.mxu3 %v147_v43 }
  0x39   :  { %218 = vmatmul.f32.vlgmr.msra.gmra.mxu2 %v24_v44  ;;  %253 = vmatpush.msrb.mxu0 %v98_v45 }
  0x3a   :  { %272 = vmatpush.msrb.mxu1 %v115_v46  ;;  %294 = vmatpush.msrb.mxu2 %v129_v47 }
  0x3b   :  { %313 = vmatpush.msrb.mxu3 %v146_v48  ;;  %178 = vmatmul.f32.vlgmr.msra.gmra.mxu0 %v22_v49 }
  0x3c   :  { %238 = vmatmul.f32.vlgmr.msra.gmra.mxu3 %v25_v50  ;;  %254 = vmatpush.msrb.mxu0 %v97_v51 }
  0x3d   :  { %273 = vmatpush.msrb.mxu1 %v114_v52  ;;  %295 = vmatpush.msrb.mxu2 %v128_v53 }
  0x3e   :  { %314 = vmatpush.msrb.mxu3 %v145_v54  ;;  %198 = vmatmul.f32.vlgmr.msra.gmra.mxu1 %v23_v55 }
  0x3f   :  { %255 = vmatpush.msrb.mxu0 %v96_v56  ;;  %274 = vmatpush.msrb.mxu1 %v113_v57 }
  0x40   :  { %296 = vmatpush.msrb.mxu2 %v127_v58  ;;  %315 = vmatpush.msrb.mxu3 %v144_v59 }
  0x41   :  { %256 = vmatpush.msrb.mxu0 %v95_v60  ;;  %275 = vmatpush.msrb.mxu1 %v112_v61 }
  0x42   :  { %297 = vmatpush.msrb.mxu2 %v126_v62  ;;  %316 = vmatpush.msrb.mxu3 %v143_v63 }
  0x43   :  { %298 = vmatmul.f32.vlgmr.msrb.gmra.mxu2 %v28_v0  ;;  %257 = vmatpush.msrb.mxu0 %v94_v1 }
  0x44   :  { %276 = vmatpush.msrb.mxu1 %v111_v2  ;;  %317 = vmatpush.msrb.mxu3 %v142_v3 }
  0x45   :  { %258 = vmatmul.f32.vlgmr.msrb.gmra.mxu0 %v26_v4  ;;  %318 = vmatmul.f32.vlgmr.msrb.gmra.mxu3 %v29_v5 }
  0x46   :  { %277 = vmatpush.msrb.mxu1 %v110_v6 }
  0x47   :  { %278 = vmatmul.f32.vlgmr.msrb.gmra.mxu1 %v27_v7 }
  0xb8   :  { %v179_v10 = vpop.f32.mrf.mxu0 }
  0xb9   :  { %v180_v11 = vadd.f32 %v344_v9, %v179_v10 }
  0xbb   :  { %v199_v12 = vpop.f32.mrf.mxu1 }
  0xbc   :  { %v200_v13 = vadd.f32 %v199_v12, %v180_v11  ;;  %v219_v14 = vpop.f32.mrf.mxu2 }
  0xbe   :  { %v220_v15 = vadd.f32 %v219_v14, %v200_v13 }
  0xbf   :  { %v239_v16 = vpop.f32.mrf.mxu3 }
  0xc0   :  { %v240_v17 = vadd.f32 %v239_v16, %v220_v15 }
  0xc2   :  { %v259_v18 = vpop.f32.mrf.mxu0 }
  0xc3   :  { %v260_v19 = vadd.f32 %v259_v18, %v240_v17 }
  0xc4   :  { %v279_v20 = vpop.f32.mrf.mxu1 }
  0xc5   :  { %v280_v21 = vadd.f32 %v279_v20, %v260_v19 }
  0xc6   :  { %v299_v22 = vpop.f32.mrf.mxu2 }
  0xc7   :  { %v300_v23 = vadd.f32 %v299_v22, %v280_v21 }
  0xc8   :  { %v319_v24 = vpop.f32.mrf.mxu3 }
  0xc9   :  { %v320_v25 = vadd.f32 %v319_v24, %v300_v23 }
  0xcb   :  { %v322_v27 = vmax.f32 %v320_v25, 0.0 }
  0xcd   :  { %v327_v28 = vmul.f32 %v345_v26, %v322_v27 }
  0xcf   :  { %v329_v29 = vsel %vm328_vm0, %v327_v28, 0.0 }
  0xd0   :  { %330 = vadd.xlane.f32.xlu0 %v329_v29 }
 0x143   :  { %v331_v31 = vpop.xlane.xlu0 %330 }
 0x144   :  { %v336_v32 = vadd.f32 %v346_v30, %v331_v31 }
 0x146   :  { %v337_v33 = vmax.f32 %v336_v32, 0.0 }
 0x148   :  { %339 = vst.msk [vmem:[%s802_s5] sm:$0xff] %vm338_vm1, %v337_v33 }

</bundles_post_ra>
